<compile_context>
chip_gen: v5e
topology: v5e:2x2
jax: 0.10.0
libtpu: 0.0.40
codegen_flags: <defaults>
</compile_context>

<pallas_src>
import jax
import jax.numpy as jnp
from jax.experimental import pallas as pl
from jax.experimental.pallas import tpu as pltpu


_BLOCK_M = 512  # rows per tile; 2 double-buffered (512, 4096) f32 tiles = 16 MiB VMEM


def _dhead_kernel(x_ref, w_ref, b_ref, o_ref):
    # x_ref: (TM, K) patch rows (VMEM, tiled over M)
    # w_ref: (1, K)  flattened conv weight (VMEM, resident across grid)
    # b_ref: (1,)    bias (SMEM scalar)
    # o_ref: (TM, 1) output tile
    x = x_ref[...].astype(jnp.float32)
    w = w_ref[...].astype(jnp.float32)              # (1, K) broadcasts over rows
    acc = jnp.sum(x * w, axis=-1, keepdims=True)    # VPU multiply + XLU lane reduce
    acc = acc + b_ref[0]                            # SMEM scalar bias add
    o_ref[...] = jax.nn.sigmoid(acc).astype(o_ref.dtype)


def _im2col(x, kh, kw):
    """General fallback: (N,C,H,W) -> (N*OH*OW, C*KH*KW), C-major then (i*kw+j)."""
    n, c, h, w = x.shape
    oh, ow = h - kh + 1, w - kw + 1
    cols = jnp.stack(
        [x[:, :, i : i + oh, j : j + ow] for i in range(kh) for j in range(kw)],
        axis=2,
    )  # (N, C, KH*KW, OH, OW)
    return cols.transpose(0, 3, 4, 1, 2).reshape(n * oh * ow, c * kh * kw)


def dhead_forward(x, weight, bias, *, block_m=_BLOCK_M):
    """x: (N, 256, H, W) NCHW; weight: (1, 256, 4, 4); bias: (1,) -> (N, 1, OH, OW)."""
    n, c, h, w = x.shape
    oc, ic, kh, kw = weight.shape
    assert oc == 1 and ic == c
    oh, ow = h - kh + 1, w - kw + 1
    k = c * kh * kw

    if (h, w) == (kh, kw):
        # Canonical DHead (4x4 feature map, 4x4 kernel): im2col is a pure reshape.
        x2d = x.reshape(n, k)
    else:
        # TODO(synk): for OH/OW > 1 this materializes im2col in HBM; an in-kernel
        # window gather over an NCHW block would remove the extra pass.
        x2d = _im2col(x, kh, kw)

    m = x2d.shape[0]
    tm = block_m if m >= block_m else m     # small M: one full-array block (always legal)
    grid_m = pl.cdiv(m, tm)

    w_row = weight.reshape(1, k).astype(jnp.float32)   # matches patch ordering
    b1 = bias.reshape(1).astype(jnp.float32)

    out = pl.pallas_call(
        _dhead_kernel,
        out_shape=jax.ShapeDtypeStruct((m, 1), x.dtype),
        grid=(grid_m,),
        in_specs=[
            pl.BlockSpec((tm, k), lambda i: (i, 0)),            # patch rows, tiled over M
            pl.BlockSpec((1, k), lambda i: (0, 0)),             # weight row, VMEM-resident
            pl.BlockSpec(memory_space=pltpu.MemorySpace.SMEM),  # bias scalar in SMEM
        ],
        out_specs=pl.BlockSpec((tm, 1), lambda i: (i, 0)),
        compiler_params=pltpu.CompilerParams(
            dimension_semantics=("parallel",),
            vmem_limit_bytes=32 * 1024 * 1024,
        ),
    )(x2d, w_row, b1)

    # Row order is (n, oh, ow) and the channel dim is size 1 -> plain reshape, no transpose.
    return out.reshape(n, 1, oh, ow)


if __name__ == "__main__":
    key = jax.random.PRNGKey(0)
    kx, kw_, kb = jax.random.split(key, 3)

    # Canonical discriminator-head input: N=2, C=256, H=W=4  ->  output (2,1,1,1)
    N, C, H, W = 2, 256, 4, 4
    x = jax.random.normal(kx, (N, C, H, W), dtype=jnp.float32)

    # Deterministic synthetic parameters (shapes from nn.Conv2d(256, 1, 4))
    weight = jax.random.normal(kw_, (1, C, 4, 4), dtype=jnp.float32) * 0.02
    bias = jax.random.normal(kb, (1,), dtype=jnp.float32) * 0.02

    out = jax.block_until_ready(dhead_forward(x, weight, bias))
    assert out.shape == (N, 1, 1, 1), out.shape

    # Pure-JAX reference: for H=W=KH=KW the conv is x.reshape(N,-1) @ w_flat + b, then sigmoid.
    ref = jax.nn.sigmoid(
        x.reshape(N, -1) @ weight.reshape(1, -1).T + bias
    ).reshape(N, 1, 1, 1)
    assert jnp.allclose(out, ref, atol=1e-5, rtol=1e-5)

    print("KERNEL_OK")
</pallas_src>

<mosaic_0001>
module attributes {stable_mosaic.version = 11 : i64} {
  func.func @_dhead_kernel(%arg0: i32, %arg1: memref<2x4096xf32, #tpu.memory_space<vmem>>, %arg2: memref<1x4096xf32, #tpu.memory_space<vmem>>, %arg3: memref<1xf32, #tpu.memory_space<smem>>, %arg4: memref<2x1xf32, #tpu.memory_space<vmem>>) attributes {dimension_semantics = [#tpu.dimension_semantics<parallel>], iteration_bounds = array<i64: 1>, scalar_prefetch = 0 : i64, scratch_operands = 0 : i64, tpu.core_type = #tpu.core_type<tc>, window_params = [{transform_indices = @transform_0, window_bounds = array<i64: 2, 4096>}, {pipeline_mode = #tpu.pipeline_mode<synchronous>, transform_indices = @transform_1, window_bounds = array<i64: 1, 4096>}, {transform_indices = @transform_2, window_bounds = array<i64: 1>}, {transform_indices = @transform_3, window_bounds = array<i64: 2, 1>}]} {
    %c0 = arith.constant 0 : index
    %c0_0 = arith.constant 0 : index
    %0 = vector.load %arg1[%c0, %c0_0] : memref<2x4096xf32, #tpu.memory_space<vmem>>, vector<2x4096xf32>
    %c0_1 = arith.constant 0 : index
    %c0_2 = arith.constant 0 : index
    %1 = vector.load %arg2[%c0_1, %c0_2] : memref<1x4096xf32, #tpu.memory_space<vmem>>, vector<1x4096xf32>
    %2 = vector.broadcast %1 : vector<1x4096xf32> to vector<2x4096xf32>
    %3 = arith.mulf %0, %2 : vector<2x4096xf32>
    %cst = arith.constant dense<0.000000e+00> : vector<2xf32>
    %4 = vector.multi_reduction <add>, %3, %cst [1] : vector<2x4096xf32> to vector<2xf32>
    %5 = vector.shape_cast %4 : vector<2xf32> to vector<2x1xf32>
    %c0_3 = arith.constant 0 : index
    %6 = memref.load %arg3[%c0_3] : memref<1xf32, #tpu.memory_space<smem>>
    %7 = vector.broadcast %6 : f32 to vector<2x1xf32>
    %8 = arith.addf %5, %7 : vector<2x1xf32>
    %9 = arith.negf %8 : vector<2x1xf32>
    %10 = math.exp %9 : vector<2x1xf32>
    %cst_4 = arith.constant 1.000000e+00 : f32
    %11 = vector.broadcast %cst_4 : f32 to vector<2x1xf32>
    %12 = arith.addf %11, %10 : vector<2x1xf32>
    %13 = arith.divf %11, %12 : vector<2x1xf32>
    %c0_5 = arith.constant 0 : index
    %c0_6 = arith.constant 0 : index
    %14 = vector.load %arg4[%c0_5, %c0_6] : memref<2x1xf32, #tpu.memory_space<vmem>>, vector<2x1xf32>
    tpu.vector_store %arg4[%c0_5, %c0_6], %13 {strides = array<i32>} : memref<2x1xf32, #tpu.memory_space<vmem>>, vector<2x1xf32>,
    return
  }
  func.func @transform_0(%arg0: i32) -> (i32, i32) {
    %c0_i32 = arith.constant 0 : i32
    %c0_i32_0 = arith.constant 0 : i32
    return %arg0, %c0_i32 : i32, i32
  }
  func.func @transform_1(%arg0: i32) -> (i32, i32) {
    %c0_i32 = arith.constant 0 : i32
    %c0_i32_0 = arith.constant 0 : i32
    %c0_i32_1 = arith.constant 0 : i32
    return %c0_i32, %c0_i32_0 : i32, i32
  }
  func.func @transform_2(%arg0: i32) -> i32 {
    %c0_i32 = arith.constant 0 : i32
    %c0_i32_0 = arith.constant 0 : i32
    return %c0_i32 : i32
  }
  func.func @transform_3(%arg0: i32) -> (i32, i32) {
    %c0_i32 = arith.constant 0 : i32
    %c0_i32_0 = arith.constant 0 : i32
    return %arg0, %c0_i32 : i32, i32
  }
}

</mosaic_0001>

<bundles_post_ra>
// kernel: tpu_custom_call.1
= control target key start
LH: loop header
LB: loop body
LE: loop exit
PB: predicated region body
PF: predicated region fallthrough
CT: control target
= control target key end

     0   :  { %9 = vsyncpa [#allocation4], 0  ;;  %s493_s0 = inlined_call_operand.hbm [shape: f32[2,4096], index: 0, kind: input, shape index: {}]   ;;  %s494_s1 = inlined_call_operand.hbm [shape: f32[1,4096], index: 1, kind: input, shape index: {}]   ;;  %s495_s2 = inlined_call_operand.<no memory space> [shape: f32[1], index: 2, kind: input, shape index: {}]   ;;  %s496_s3 = inlined_call_operand.vmem [shape: f32[2,1], index: 3, kind: output, shape index: {}]  }
   0x1   :  { %s16_s14 = sshll.u32 %s493_s0, 4  ;;  %s17_s14 = int_to_ptr.hbm [resolvable:$true] %s16_s14 }
   0x2   :  { %10 = vsyncpa [#allocation6], 0  ;;  %s393_s15 = smov [#allocation3]   ;;  %s27_s19 = sshll.u32 %s494_s1, 4  ;;  %s28_s19 = int_to_ptr.hbm [resolvable:$true] %s27_s19 }
   0x3   :  { %s18_s16 = sshll.u32 %s393_s15, 4  ;;  %s394_s20 = smov [#allocation5]   ;;  %s19_s16 = int_to_ptr.vmem [resolvable:$true] %s18_s16 }
   0x4   :  { %21 = dma.hbm_to_vmem [thread:$0]  %s17_s14, 1024, %s19_s16, [#allocation4]  }
   0x5   :  { %s29_s21 = sshll.u32 %s394_s20, 4  ;;  %s30_s21 = int_to_ptr.vmem [resolvable:$true] %s29_s21 }
   0x6   :  { %32 = dma.hbm_to_vmem [thread:$0]  %s28_s19, 512, %s30_s21, [#allocation6]  }
   0x7   :  { %389 = dma.done.wait [#allocation4], 1024  }
   0x8   :  { %390 = vsyncadd [#allocation4], 4294966272 }
   0x9   :  { %391 = dma.done.wait [#allocation6], 512  }
   0xa   :  { %392 = vsyncadd [#allocation6], 4294966784  ;;  %v51_v0 = vld [vmem:[#allocation5] sm:$0xff]  ;;  %v52_v13 = vld [vmem:[#allocation5 + $0x8] sm:$0xff]  ;;  %vm115_vm0 = vcmask 1041408   ;;  %vm117_vm1 = vcmask 1045508  }
   0xb   :  { %v60_v1 = vperm.slane %v51_v0, 1  ;;  %v61_v2 = vperm.slane %v51_v0, 2  ;;  %v62_v3 = vperm.slane %v51_v0, 3  ;;  %v64_v4 = vperm.slane %v51_v0, 5  ;;  %v43_v26 = vld [vmem:[#allocation3] sm:$0xff]  ;;  %v44_v27 = vld [vmem:[#allocation3 + $0x8] sm:$0xff] }
   0xc   :  { %v65_v5 = vperm.slane %v51_v0, 6  ;;  %v66_v6 = vperm.slane %v51_v0, 7  ;;  %v59_v7 = vperm.slane %v51_v0, 0  ;;  %v63_v8 = vperm.slane %v51_v0, 4  ;;  %v53_v32 = vld [vmem:[#allocation5 + $0x10] sm:$0xff]  ;;  %v427_v43 = vld [vmem:[#allocation5 + $0x18] sm:$0xff] }
   0xd   :  { %v91_v9 = vrot.slane %v60_v1, 6  ;;  %v92_v10 = vrot.slane %v61_v2, 4  ;;  %v93_v11 = vrot.slane %v62_v3, 2  ;;  %v94_v12 = vrot.slane %v64_v4, 6  ;;  %v45_v53 = vld [vmem:[#allocation3 + $0x10] sm:$0xff]  ;;  %v46_v58 = vld [vmem:[#allocation3 + $0x18] sm:$0xff] }
   0xe   :  { %v95_v14 = vrot.slane %v65_v5, 4  ;;  %v96_v15 = vrot.slane %v66_v6, 2  ;;  %vm119_vm2 = vcmask 1043456   ;;  %v68_v16 = vperm.slane %v52_v13, 1 }
   0xf   :  { %v116_v17 = vsel %vm115_vm0, %v59_v7, %v91_v9  ;;  %v118_v18 = vsel %vm117_vm1, %v92_v10, %v93_v11  ;;  %v121_v19 = vsel %vm115_vm0, %v63_v8, %v94_v12  ;;  %v69_v20 = vperm.slane %v52_v13, 2 }
  0x10   :  { %v70_v21 = vperm.slane %v52_v13, 3  ;;  %v72_v22 = vperm.slane %v52_v13, 5  ;;  %v122_v23 = vsel %vm117_vm1, %v95_v14, %v96_v15  ;;  %v73_v24 = vperm.slane %v52_v13, 6 }
  0x11   :  { %v74_v25 = vperm.slane %v52_v13, 7  ;;  %v120_v28 = vsel %vm119_vm2, %v116_v17, %v118_v18  ;;  %v123_v29 = vsel %vm119_vm2, %v121_v19, %v122_v23  ;;  %v67_v30 = vperm.slane %v52_v13, 0 }
  0x12   :  { %v71_v31 = vperm.slane %v52_v13, 4  ;;  %v97_v33 = vrot.slane %v68_v16, 6  ;;  %v98_v34 = vrot.slane %v69_v20, 4  ;;  %v99_v35 = vrot.slane %v70_v21, 2 }
  0x13   :  { %v100_v36 = vrot.slane %v72_v22, 6  ;;  %v101_v37 = vrot.slane %v73_v24, 4  ;;  %v102_v38 = vrot.slane %v74_v25, 2  ;;  %v150_v39 = vmul.f32 %v120_v28, %v43_v26 }
  0x14   :  { %v151_v40 = vmul.f32 %v123_v29, %v44_v27  ;;  %v76_v41 = vperm.slane %v53_v32, 1  ;;  %v77_v42 = vperm.slane %v53_v32, 2  ;;  %v78_v44 = vperm.slane %v53_v32, 3  ;;  %v47_v27 = vld [vmem:[#allocation3 + $0x20] sm:$0xff] }
  0x15   :  { %166 = vst [vmem:[#allocation1] ss:$4 sm:$0xff] %v150_v39  ;;  %v80_v45 = vperm.slane %v53_v32, 5  ;;  %v124_v46 = vsel %vm115_vm0, %v67_v30, %v97_v33  ;;  %v125_v47 = vsel %vm117_vm1, %v98_v34, %v99_v35  ;;  %v81_v48 = vperm.slane %v53_v32, 6 }
  0x16   :  { %168 = vst [vmem:[#allocation1 + $0x20] ss:$4 sm:$0xff] %v151_v40  ;;  %v82_v49 = vperm.slane %v53_v32, 7  ;;  %v127_v50 = vsel %vm115_vm0, %v71_v31, %v100_v36  ;;  %v128_v51 = vsel %vm117_vm1, %v101_v37, %v102_v38  ;;  %v75_v52 = vperm.slane %v53_v32, 0 }
  0x17   :  { %v79_v54 = vperm.slane %v53_v32, 4  ;;  %v84_v55 = vperm.slane %v427_v43, 1  ;;  %v85_v56 = vperm.slane %v427_v43, 2  ;;  %v126_v57 = vsel %vm119_vm2, %v124_v46, %v125_v47  ;;  %v48_v32 = vld [vmem:[#allocation3 + $0x28] sm:$0xff] }
  0x18   :  { %v86_v59 = vperm.slane %v427_v43, 3  ;;  %v103_v60 = vrot.slane %v76_v41, 6  ;;  %v104_v61 = vrot.slane %v77_v42, 4  ;;  %v129_v62 = vsel %vm119_vm2, %v127_v50, %v128_v51 }
  0x19   :  { %v105_v63 = vrot.slane %v78_v44, 2  ;;  %v106_v0 = vrot.slane %v80_v45, 6  ;;  %v107_v1 = vrot.slane %v81_v48, 4  ;;  %v108_v2 = vrot.slane %v82_v49, 2 }
  0x1a   :  { %v152_v3 = vmul.f32 %v126_v57, %v45_v53  ;;  %v153_v6 = vmul.f32 %v129_v62, %v46_v58  ;;  %v88_v13 = vperm.slane %v427_v43, 5  ;;  %v89_v17 = vperm.slane %v427_v43, 6 }
  0x1b   :  { %v130_v18 = vsel %vm115_vm0, %v75_v52, %v103_v60  ;;  %v131_v19 = vsel %vm117_vm1, %v104_v61, %v105_v63  ;;  %v90_v21 = vperm.slane %v427_v43, 7  ;;  %v133_v22 = vsel %vm115_vm0, %v79_v54, %v106_v0  ;;  %v49_v63 = vld [vmem:[#allocation3 + $0x30] sm:$0xff] }
  0x1c   :  { %v169_v4 = vld.sshfl [vmem:[#allocation1] sm:$0xff pattern:$0x73625140]  ;;  %v170_v5 = vld.sshfl [vmem:[#allocation1 + $0x8] sm:$0xff pattern:$0x73625140]  ;;  %v134_v23 = vsel %vm117_vm1, %v107_v1, %v108_v2  ;;  %v132_v30 = vsel %vm119_vm2, %v130_v18, %v131_v19 }
  0x1d   :  { %v171_v7 = vld.sshfl [vmem:[#allocation1 + $0x10] sm:$0xff pattern:$0x73625140]  ;;  %v172_v8 = vld.sshfl [vmem:[#allocation1 + $0x18] sm:$0xff pattern:$0x73625140]  ;;  %v135_v35 = vsel %vm119_vm2, %v133_v22, %v134_v23  ;;  %v154_v41 = vmul.f32 %v132_v30, %v47_v27 }
  0x1e   :  { %v173_v9 = vld.sshfl [vmem:[#allocation1 + $0x20] sm:$0xff pattern:$0x73625140]  ;;  %v174_v10 = vld.sshfl [vmem:[#allocation1 + $0x28] sm:$0xff pattern:$0x73625140]  ;;  %v155_v46 = vmul.f32 %v135_v35, %v48_v32 }
  0x1f   :  { %v175_v11 = vld.sshfl [vmem:[#allocation1 + $0x30] sm:$0xff pattern:$0x73625140]  ;;  %v176_v12 = vld.sshfl [vmem:[#allocation1 + $0x38] sm:$0xff pattern:$0x73625140] }
  0x20   :  { %177 = vst [vmem:[#allocation1] ss:$4 sm:$0xff] %v152_v3  ;;  %v239_v14 = vsel %vm115_vm0, %v169_v4, 0.0  ;;  %v240_v15 = vsel %vm115_vm0, %v170_v5, 0.0  ;;  %v242_v16 = vsel %vm115_vm0, %v171_v7, 0.0  ;;  %v244_v24 = vsel %vm115_vm0, %v172_v8, 0.0 }
  0x21   :  { %178 = vst [vmem:[#allocation1 + $0x20] ss:$4 sm:$0xff] %v153_v6  ;;  %v241_v20 = vadd.f32 %v240_v15, %v239_v14  ;;  %v83_v25 = vperm.slane %v427_v43, 0  ;;  %v87_v28 = vperm.slane %v427_v43, 4  ;;  %v109_v29 = vrot.slane %v84_v55, 6  ;;  %v50_v2 = vld [vmem:[#allocation3 + $0x38] sm:$0xff] }
  0x22   :  { %v246_v31 = vsel %vm115_vm0, %v173_v9, 0.0  ;;  %v110_v33 = vrot.slane %v85_v56, 4  ;;  %v111_v34 = vrot.slane %v86_v59, 2  ;;  %v112_v37 = vrot.slane %v88_v13, 6 }
  0x23   :  { %v243_v26 = vadd.f32 %v242_v16, %v241_v20  ;;  %v113_v38 = vrot.slane %v89_v17, 4  ;;  %v114_v39 = vrot.slane %v90_v21, 2  ;;  %v248_v40 = vsel %vm115_vm0, %v174_v10, 0.0 }
  0x24   :  { %v250_v43 = vsel %vm115_vm0, %v175_v11, 0.0  ;;  %v252_v45 = vsel %vm115_vm0, %v176_v12, 0.0  ;;  %v136_v56 = vsel %vm115_vm0, %v83_v25, %v109_v29  ;;  %v137_v57 = vsel %vm117_vm1, %v110_v33, %v111_v34 }
  0x25   :  { %v245_v36 = vadd.f32 %v244_v24, %v243_v26  ;;  %v139_v59 = vsel %vm115_vm0, %v87_v28, %v112_v37  ;;  %v140_v60 = vsel %vm117_vm1, %v113_v38, %v114_v39  ;;  %v138_v0 = vsel %vm119_vm2, %v136_v56, %v137_v57 }
  0x26   :  { %v141_v3 = vsel %vm119_vm2, %v139_v59, %v140_v60  ;;  %v156_v6 = vmul.f32 %v138_v0, %v49_v63  ;;  %vm326_vm6 = vcmask 1024  }
  0x27   :  { %v179_v42 = vld.sshfl [vmem:[#allocation1] sm:$0xff pattern:$0x73625140]  ;;  %v247_v44 = vadd.f32 %v246_v31, %v245_v36  ;;  %v180_v47 = vld.sshfl [vmem:[#allocation1 + $0x8] sm:$0xff pattern:$0x73625140]  ;;  %v157_v9 = vmul.f32 %v141_v3, %v50_v2  ;;  %v305_v3 = vstv %s495_s2 }
  0x28   :  { %v181_v48 = vld.sshfl [vmem:[#allocation1 + $0x10] sm:$0xff pattern:$0x73625140]  ;;  %v182_v49 = vld.sshfl [vmem:[#allocation1 + $0x18] sm:$0xff pattern:$0x73625140] }
  0x29   :  { %v183_v50 = vld.sshfl [vmem:[#allocation1 + $0x20] sm:$0xff pattern:$0x73625140]  ;;  %v249_v51 = vadd.f32 %v248_v40, %v247_v44  ;;  %v184_v52 = vld.sshfl [vmem:[#allocation1 + $0x28] sm:$0xff pattern:$0x73625140] }
  0x2a   :  { %v185_v53 = vld.sshfl [vmem:[#allocation1 + $0x30] sm:$0xff pattern:$0x73625140]  ;;  %v186_v54 = vld.sshfl [vmem:[#allocation1 + $0x38] sm:$0xff pattern:$0x73625140] }
  0x2b   :  { %187 = vst [vmem:[#allocation1] ss:$4 sm:$0xff] %v154_v41  ;;  %v251_v55 = vadd.f32 %v250_v43, %v249_v51  ;;  %v254_v58 = vsel %vm115_vm0, %v179_v42, 0.0  ;;  %v256_v62 = vsel %vm115_vm0, %v180_v47, 0.0  ;;  %v258_v4 = vsel %vm115_vm0, %v181_v48, 0.0 }
  0x2c   :  { %188 = vst [vmem:[#allocation1 + $0x20] ss:$4 sm:$0xff] %v155_v46  ;;  %v260_v7 = vsel %vm115_vm0, %v182_v49, 0.0  ;;  %v262_v8 = vsel %vm115_vm0, %v183_v50, 0.0  ;;  %v264_v20 = vsel %vm115_vm0, %v184_v52, 0.0  ;;  %v266_v22 = vsel %vm115_vm0, %v185_v53, 0.0 }
  0x2d   :  { %v253_v61 = vadd.f32 %v252_v45, %v251_v55  ;;  %v268_v24 = vsel %vm115_vm0, %v186_v54, 0.0 }
  0x2f   :  { %v255_v1 = vadd.f32 %v254_v58, %v253_v61 }
  0x31   :  { %v257_v5 = vadd.f32 %v256_v62, %v255_v1 }
  0x32   :  { %v189_v10 = vld.sshfl [vmem:[#allocation1] sm:$0xff pattern:$0x73625140]  ;;  %v190_v11 = vld.sshfl [vmem:[#allocation1 + $0x8] sm:$0xff pattern:$0x73625140] }
  0x33   :  { %v191_v12 = vld.sshfl [vmem:[#allocation1 + $0x10] sm:$0xff pattern:$0x73625140]  ;;  %v259_v13 = vadd.f32 %v258_v4, %v257_v5  ;;  %v192_v14 = vld.sshfl [vmem:[#allocation1 + $0x18] sm:$0xff pattern:$0x73625140] }
  0x34   :  { %v193_v15 = vld.sshfl [vmem:[#allocation1 + $0x20] sm:$0xff pattern:$0x73625140]  ;;  %v194_v16 = vld.sshfl [vmem:[#allocation1 + $0x28] sm:$0xff pattern:$0x73625140] }
  0x35   :  { %v195_v17 = vld.sshfl [vmem:[#allocation1 + $0x30] sm:$0xff pattern:$0x73625140]  ;;  %v261_v18 = vadd.f32 %v260_v7, %v259_v13  ;;  %v196_v19 = vld.sshfl [vmem:[#allocation1 + $0x38] sm:$0xff pattern:$0x73625140] }
  0x36   :  { %197 = vst [vmem:[#allocation1] ss:$4 sm:$0xff] %v156_v6  ;;  %v270_v26 = vsel %vm115_vm0, %v189_v10, 0.0  ;;  %v272_v28 = vsel %vm115_vm0, %v190_v11, 0.0  ;;  %v274_v30 = vsel %vm115_vm0, %v191_v12, 0.0  ;;  %v276_v32 = vsel %vm115_vm0, %v192_v14, 0.0 }
  0x37   :  { %198 = vst [vmem:[#allocation1 + $0x20] ss:$4 sm:$0xff] %v157_v9  ;;  %v263_v21 = vadd.f32 %v262_v8, %v261_v18  ;;  %v278_v34 = vsel %vm115_vm0, %v193_v15, 0.0  ;;  %v280_v36 = vsel %vm115_vm0, %v194_v16, 0.0  ;;  %v282_v38 = vsel %vm115_vm0, %v195_v17, 0.0 }
  0x38   :  { %v284_v41 = vsel %vm115_vm0, %v196_v19, 0.0 }
  0x39   :  { %v265_v23 = vadd.f32 %v264_v20, %v263_v21 }
  0x3b   :  { %v267_v25 = vadd.f32 %v266_v22, %v265_v23 }
  0x3d   :  { %v269_v27 = vadd.f32 %v268_v24, %v267_v25  ;;  %v199_v39 = vld.sshfl [vmem:[#allocation1] sm:$0xff pattern:$0x73625140]  ;;  %v200_v42 = vld.sshfl [vmem:[#allocation1 + $0x8] sm:$0xff pattern:$0x73625140] }
  0x3e   :  { %v286_v43 = vsel %vm115_vm0, %v199_v39, 0.0  ;;  %v201_v45 = vld.sshfl [vmem:[#allocation1 + $0x10] sm:$0xff pattern:$0x73625140]  ;;  %v288_v47 = vsel %vm115_vm0, %v200_v42, 0.0 }
  0x3f   :  { %v271_v29 = vadd.f32 %v270_v26, %v269_v27  ;;  %v202_v48 = vld.sshfl [vmem:[#allocation1 + $0x18] sm:$0xff pattern:$0x73625140]  ;;  %v290_v50 = vsel %vm115_vm0, %v201_v45, 0.0 }
  0x40   :  { %v203_v51 = vld.sshfl [vmem:[#allocation1 + $0x20] sm:$0xff pattern:$0x73625140]  ;;  %v292_v53 = vsel %vm115_vm0, %v202_v48, 0.0 }
  0x41   :  { %v273_v31 = vadd.f32 %v272_v28, %v271_v29  ;;  %v204_v54 = vld.sshfl [vmem:[#allocation1 + $0x28] sm:$0xff pattern:$0x73625140]  ;;  %v294_v56 = vsel %vm115_vm0, %v203_v51, 0.0 }
  0x42   :  { %v205_v57 = vld.sshfl [vmem:[#allocation1 + $0x30] sm:$0xff pattern:$0x73625140]  ;;  %v296_v59 = vsel %vm115_vm0, %v204_v54, 0.0 }
  0x43   :  { %v275_v33 = vadd.f32 %v274_v30, %v273_v31  ;;  %v206_v60 = vld.sshfl [vmem:[#allocation1 + $0x38] sm:$0xff pattern:$0x73625140]  ;;  %v298_v62 = vsel %vm115_vm0, %v205_v57, 0.0 }
  0x44   :  { %v300_v0 = vsel %vm115_vm0, %v206_v60, 0.0 }
  0x45   :  { %v277_v35 = vadd.f32 %v276_v32, %v275_v33 }
  0x47   :  { %v279_v37 = vadd.f32 %v278_v34, %v277_v35 }
  0x49   :  { %v281_v40 = vadd.f32 %v280_v36, %v279_v37 }
  0x4b   :  { %v283_v44 = vadd.f32 %v282_v38, %v281_v40 }
  0x4d   :  { %v285_v46 = vadd.f32 %v284_v41, %v283_v44 }
  0x4f   :  { %v287_v49 = vadd.f32 %v286_v43, %v285_v46 }
  0x51   :  { %v289_v52 = vadd.f32 %v288_v47, %v287_v49 }
  0x53   :  { %v291_v55 = vadd.f32 %v290_v50, %v289_v52 }
  0x55   :  { %v293_v58 = vadd.f32 %v292_v53, %v291_v55 }
  0x57   :  { %v295_v61 = vadd.f32 %v294_v56, %v293_v58 }
  0x59   :  { %v297_v63 = vadd.f32 %v296_v59, %v295_v61 }
  0x5b   :  { %v299_v1 = vadd.f32 %v298_v62, %v297_v63 }
  0x5d   :  { %v301_v2 = vadd.f32 %v300_v0, %v299_v1 }
  0x5f   :  { %302 = vadd.xlane.f32.xlu0 %v301_v2 }
  0xd2   :  { %v303_v4 = vpop.xlane.xlu0 %302 }
  0xd3   :  { %v306_v5 = vadd.f32 %v305_v3, %v303_v4 }
  0xd5   :  { %v334_v6 = vmul.f32 -1.442695, %v306_v5 }
  0xd7   :  { %337 = vpow2.f32 %v334_v6 }
  0xdd   :  { %v338_v7 = vpop.eup %337 }
  0xde   :  { %v310_v8 = vadd.f32 1.0, %v338_v7 }
  0xe0   :  { %339 = vrcp.f32 %v310_v8  ;;  %v322_v12 = vand.u32 2147483648, %v310_v8  ;;  %v320_v14 = vand.u32 2147483647, %v310_v8  ;;  %vm316_vm4 = vweird.f32 %v310_v8 }
  0xe2   :  { %v323_v16 = vor.u32 1.1754944e-38, %v322_v12  ;;  %vm321_vm7 = vcmp.eq.f32.partialorder %v320_v14, 8.507059e+37 }
  0xe6   :  { %v340_v9 = vpop.eup %339 }
  0xe7   :  { %v312_v10 = vmul.f32 %v340_v9, %v310_v8  ;;  %vm317_vm3 = vweird.f32 %v340_v9 }
  0xe8   :  { %vm318_vm5 = vmor %vm316_vm4, %vm317_vm3 }
  0xe9   :  { %v313_v11 = vsub.f32 1.0, %v312_v10 }
  0xeb   :  { %v314_v13 = vmul.f32 %v340_v9, %v313_v11 }
  0xed   :  { %v315_v15 = vadd.f32 %v340_v9, %v314_v13 }
  0xef   :  { %v319_v17 = vsel %vm318_vm5, %v340_v9, %v315_v15 }
  0xf0   :  { %v324_v18 = vsel %vm321_vm7, %v323_v16, %v319_v17 }
  0xf1   :  { %327 = vst.msk [vmem:[%s496_s3] sm:$0x3] %vm326_vm6, %v324_v18 }
  0xf2   :  { %332 = vsyncpa [#allocation4], 1 }
  0xf3   :  { %333 = vsyncpa [#allocation6], 1 }

</bundles_post_ra>
